<compile_context>
chip_gen: v7x
topology: tpu7x:2x2x1
jax: 0.10.0
libtpu: 0.0.40
codegen_flags: <defaults>
</compile_context>

<pallas_src>
import jax
import jax.numpy as jnp
from jax import lax
from jax.experimental import pallas as pl
from jax.experimental.pallas import tpu as pltpu

ALPHA = 1.0   # folded away in the kernel (multiply by 1.0)
GAMMA = 2.0   # implemented as an explicit square

_TILE_C_MAX = 1024          # max class-tile width (multiple of 128)
_VMEM_BUDGET = 24 << 20     # double-buffered working-set budget (safe on v7x 64 MiB)


def _make_kernel(n_rows, n_cols, tile_n, tile_c, rt_per_part, ct, mask_rows, mask_cols):
    nsub = tile_n // 8

    def fold(v):
        # (tile_n, tile_c) -> (1, 8, tile_c) per-(sublane, lane) partial sums.
        # Layout-preserving reshape + leading-axis sum => pure VPU adds; the single
        # cross-lane reduction happens once, in the wrapper.
        return v.reshape(nsub, 8, tile_c).sum(axis=0, keepdims=True)

    def kernel(x_ref, t_ref, out_ref):
        p = pl.program_id(0)
        i = pl.program_id(1)
        j = pl.program_id(2)

        # Resident per-partition accumulator: out block index is (p, 0, 0) for all i, j.
        @pl.when(jnp.logical_and(i == 0, j == 0))
        def _():
            out_ref[...] = jnp.zeros_like(out_ref)

        x = x_ref[...].astype(jnp.float32)     # upcast in-kernel (input may be bf16)
        t = t_ref[...]                         # (tile_n, 1) int32 class ids

        col_ids = lax.broadcasted_iota(jnp.int32, (tile_n, tile_c), 1)
        if ct > 1:
            col_ids = col_ids + j * tile_c
        is_tgt = col_ids == t                  # (tile_n, tile_c) bool

        # Only the selected term of the one-hot BCE survives per element:
        #   q   = p (target class) else 1 - p
        #   bce = -clamp(log q, -100)
        #   pt  = exp(-bce) == q (up to f32 FTZ), so focal = (1-q)^2 * bce  (alpha=1, gamma=2)
        q = jnp.where(is_tgt, x, 1.0 - x)
        bce = -jnp.maximum(jnp.log(q), -100.0)
        one_m_pt = 1.0 - q
        f_loss = one_m_pt * one_m_pt * bce

        if mask_rows or mask_cols:
            g = p * rt_per_part + i            # UNclamped global row-tile index
            cond = None
            if mask_rows:
                cond = (g + 1) * tile_n > n_rows
            if mask_cols:
                ccond = (j + 1) * tile_c > n_cols
                cond = ccond if cond is None else jnp.logical_or(cond, ccond)

            @pl.when(cond)                     # only tiles touching a ragged edge
            def _():
                valid = None
                if mask_rows:
                    row_ids = g * tile_n + lax.broadcasted_iota(
                        jnp.int32, (tile_n, tile_c), 0)
                    valid = row_ids < n_rows
                if mask_cols:
                    cvalid = col_ids < n_cols
                    valid = cvalid if valid is None else jnp.logical_and(valid, cvalid)
                # select (not multiply) so garbage/NaN in OOB block regions cannot propagate
                out_ref[...] += fold(jnp.where(valid, f_loss, 0.0))

            @pl.when(jnp.logical_not(cond))    # hot path: no per-element mask
            def _():
                out_ref[...] += fold(f_loss)
        else:
            out_ref[...] += fold(f_loss)

    return kernel


def focal_loss(inputs, targets, *, tile_n=None, tile_c=None,
               vmem_budget_bytes=_VMEM_BUDGET):
    """inputs: (N, C) probabilities (f32 or bf16); targets: (N,) int class ids.
    Returns the scalar mean focal loss (alpha=1, gamma=2, logits=False, reduce=True)."""
    n, c = inputs.shape
    x = inputs                                        # no wrapper-side cast/pad
    t = jnp.asarray(targets, dtype=jnp.int32).reshape(n, 1)

    # ---- class (lane) tiling ------------------------------------------------
    if tile_c is None:
        tile_c = c if c <= _TILE_C_MAX else _TILE_C_MAX
    tile_c = int(tile_c)
    if tile_c >= c:
        tile_c = c                                    # full-width block: any C allowed
    else:
        tile_c = max(128, (tile_c // 128) * 128)      # partial-width blocks: lane aligned
        if tile_c >= c:
            tile_c = c
    ct = pl.cdiv(c, tile_c)
    mask_cols = (c % tile_c) != 0

    # ---- row (sublane) tiling from a VMEM byte budget -------------------------
    itemsize = jnp.dtype(x.dtype).itemsize
    c_lanes = ((tile_c + 127) // 128) * 128           # lane-padded width in VMEM
    per_row = itemsize * c_lanes + 4 * 128            # input row + lane-padded targets row
    if tile_n is None:
        tile_n = vmem_budget_bytes // (2 * per_row)   # 2 = double buffering
    tile_n = max(8, (int(tile_n) // 8) * 8)
    if n >= 8:
        tile_n = min(tile_n, max(8, (n // 8) * 8))    # never exceed N when N >= 8
    else:
        tile_n = 8                                    # single partial block

    total_rt = pl.cdiv(n, tile_n)

    # ---- split row tiles over TensorCores (helps v7x; serial/harmless on v5e/v6e)
    num_parts = 2 if total_rt >= 2 else 1
    rt_per_part = pl.cdiv(total_rt, num_parts)
    mask_rows = (n % tile_n != 0) or (num_parts * rt_per_part != total_rt)

    if num_parts * rt_per_part > total_rt:
        # Clamp the DMA source block; the duplicate tile is zeroed in-kernel via the
        # unclamped global row ids.
        def row_block(p, i):
            return jnp.minimum(p * rt_per_part + i, total_rt - 1)
    else:
        def row_block(p, i):
            return p * rt_per_part + i

    x_spec = pl.BlockSpec((tile_n, tile_c), lambda p, i, j: (row_block(p, i), j))
    t_spec = pl.BlockSpec((tile_n, 1), lambda p, i, j: (row_block(p, i), 0))
    o_spec = pl.BlockSpec((1, 8, tile_c), lambda p, i, j: (p, 0, 0))

    working = 2 * (tile_n * c_lanes * itemsize        # input blocks (double-buffered)
                   + tile_n * 128 * 4                 # lane-padded int32 targets blocks
                   + 8 * c_lanes * 4)                 # accumulator output block
    vmem_limit = int(min(48 << 20, max(32 << 20, working + (8 << 20))))

    kernel = _make_kernel(n, c, tile_n, tile_c, rt_per_part, ct, mask_rows, mask_cols)

    partials = pl.pallas_call(
        kernel,
        out_shape=jax.ShapeDtypeStruct((num_parts, 8, tile_c), jnp.float32),
        grid=(num_parts, rt_per_part, ct),
        in_specs=[x_spec, t_spec],
        out_specs=o_spec,
        compiler_params=pltpu.CompilerParams(
            dimension_semantics=("parallel", "arbitrary", "arbitrary"),
            vmem_limit_bytes=vmem_limit,
        ),
    )(x, t)

    # Final cross-lane reduce + mean (tiny, done once in XLA).
    return jnp.sum(partials) / float(n * c)


def _reference_focal_loss(inputs, targets):
    """Faithful JAX port of the PyTorch module (one-hot, exp, pow)."""
    n, c = inputs.shape
    p = inputs.astype(jnp.float32)
    onehot = jax.nn.one_hot(targets, c, dtype=jnp.float32)
    log_p = jnp.maximum(jnp.log(p), -100.0)
    log_1mp = jnp.maximum(jnp.log(1.0 - p), -100.0)
    bce = -(onehot * log_p + (1.0 - onehot) * log_1mp)
    pt = jnp.exp(-bce)
    return jnp.mean(ALPHA * (1.0 - pt) ** GAMMA * bce)


if __name__ == "__main__":
    key = jax.random.PRNGKey(0)
    k1, k2, k3, k4 = jax.random.split(key, 4)

    # logits=False in the reference module => inputs must be probabilities.
    N, C = 20, 32
    probs = jax.nn.sigmoid(jax.random.normal(k1, (N, C), dtype=jnp.float32))
    targets = jax.random.randint(k2, (N,), 0, C, dtype=jnp.int32)

    loss = focal_loss(probs, targets)          # default (budget-derived) tiling
    jax.block_until_ready(loss)
    ref = _reference_focal_loss(probs, targets)
    assert jnp.allclose(loss, ref, atol=1e-5, rtol=1e-5), (loss, ref)

    # Exercise C tiling, partial row/col edge tiles, the clamped OOB row tile and
    # the two-partition "parallel" grid axis on a second small problem.
    N2, C2 = 100, 160
    probs2 = jax.nn.sigmoid(jax.random.normal(k3, (N2, C2), dtype=jnp.float32))
    targets2 = jax.random.randint(k4, (N2,), 0, C2, dtype=jnp.int32)

    loss2 = focal_loss(probs2, targets2, tile_n=16, tile_c=128)
    jax.block_until_ready(loss2)
    ref2 = _reference_focal_loss(probs2, targets2)
    assert jnp.allclose(loss2, ref2, atol=1e-5, rtol=1e-5), (loss2, ref2)

    print("KERNEL_OK")
</pallas_src>

<mosaic_0001>
module attributes {stable_mosaic.version = 11 : i64} {
  func.func @kernel(%arg0: i32, %arg1: i32, %arg2: i32, %arg3: memref<16x32xf32, #tpu.memory_space<vmem>>, %arg4: memref<16x1xi32, #tpu.memory_space<vmem>>, %arg5: memref<1x8x32xf32, #tpu.memory_space<vmem>>) attributes {dimension_semantics = [#tpu.dimension_semantics<parallel>, #tpu.dimension_semantics<arbitrary>, #tpu.dimension_semantics<arbitrary>], iteration_bounds = array<i64: 2, 1, 1>, scalar_prefetch = 0 : i64, scratch_operands = 0 : i64, tpu.core_type = #tpu.core_type<tc>, window_params = [{transform_indices = @transform_0, window_bounds = array<i64: 16, 32>}, {transform_indices = @transform_1, window_bounds = array<i64: 16, 1>}, {transform_indices = @transform_2, window_bounds = array<i64: 1, 8, 32>}]} {
    %c0_i32 = arith.constant 0 : i32
    %0 = arith.cmpi eq, %arg1, %c0_i32 : i32
    %c0_i32_0 = arith.constant 0 : i32
    %1 = arith.cmpi eq, %arg2, %c0_i32_0 : i32
    %2 = arith.andi %0, %1 : i1
    %3 = arith.extui %2 : i1 to i32
    %c0_i32_1 = arith.constant 0 : i32
    %4 = arith.cmpi ne, %3, %c0_i32_1 : i32
    scf.if %4 {
      %cst_11 = arith.constant 0.000000e+00 : f32
      %32 = vector.broadcast %cst_11 : f32 to vector<1x8x32xf32>
      %c0_12 = arith.constant 0 : index
      %c0_13 = arith.constant 0 : index
      %c0_14 = arith.constant 0 : index
      %33 = vector.load %arg5[%c0_12, %c0_13, %c0_14] : memref<1x8x32xf32, #tpu.memory_space<vmem>>, vector<1x8x32xf32>
      tpu.vector_store %arg5[%c0_12, %c0_13, %c0_14], %32 {strides = array<i32>} : memref<1x8x32xf32, #tpu.memory_space<vmem>>, vector<1x8x32xf32>,
    } else {
    }
    %c0 = arith.constant 0 : index
    %c0_2 = arith.constant 0 : index
    %5 = vector.load %arg3[%c0, %c0_2] : memref<16x32xf32, #tpu.memory_space<vmem>>, vector<16x32xf32>
    %c0_3 = arith.constant 0 : index
    %c0_4 = arith.constant 0 : index
    %6 = vector.load %arg4[%c0_3, %c0_4] : memref<16x1xi32, #tpu.memory_space<vmem>>, vector<16x1xi32>
    %7 = tpu.iota {dimensions = array<i32: 1>} : vector<16x32xi32>
    %8 = vector.broadcast %6 : vector<16x1xi32> to vector<16x32xi32>
    %9 = arith.cmpi eq, %7, %8 : vector<16x32xi32>
    %cst = arith.constant 1.000000e+00 : f32
    %10 = vector.broadcast %cst : f32 to vector<16x32xf32>
    %11 = arith.subf %10, %5 : vector<16x32xf32>
    %12 = arith.select %9, %5, %11 : vector<16x32xi1>, vector<16x32xf32>
    %13 = math.log %12 : vector<16x32xf32>
    %cst_5 = arith.constant -1.000000e+02 : f32
    %14 = vector.broadcast %cst_5 : f32 to vector<16x32xf32>
    %15 = arith.maximumf %13, %14 : vector<16x32xf32>
    %cst_6 = arith.constant 0.000000e+00 : f32
    %16 = vector.broadcast %cst_6 : f32 to vector<16x32xf32>
    %17 = arith.subf %16, %15 : vector<16x32xf32>
    %cst_7 = arith.constant 1.000000e+00 : f32
    %18 = vector.broadcast %cst_7 : f32 to vector<16x32xf32>
    %19 = arith.subf %18, %12 : vector<16x32xf32>
    %20 = arith.mulf %19, %19 : vector<16x32xf32>
    %21 = arith.mulf %20, %17 : vector<16x32xf32>
    %c1_i32 = arith.constant 1 : i32
    %22 = arith.muli %arg0, %c1_i32 : i32
    %23 = arith.addi %22, %arg1 : i32
    %c1_i32_8 = arith.constant 1 : i32
    %24 = arith.addi %23, %c1_i32_8 : i32
    %c16_i32 = arith.constant 16 : i32
    %25 = arith.muli %24, %c16_i32 : i32
    %c20_i32 = arith.constant 20 : i32
    %26 = arith.cmpi sgt, %25, %c20_i32 : i32
    %27 = arith.extui %26 : i1 to i32
    %c0_i32_9 = arith.constant 0 : i32
    %28 = arith.cmpi ne, %27, %c0_i32_9 : i32
    scf.if %28 {
      %c16_i32_11 = arith.constant 16 : i32
      %32 = arith.muli %23, %c16_i32_11 : i32
      %33 = tpu.iota {dimensions = array<i32: 0>} : vector<16x32xi32>
      %34 = vector.broadcast %32 : i32 to vector<16x32xi32>
      %35 = arith.addi %34, %33 : vector<16x32xi32>
      %c20_i32_12 = arith.constant 20 : i32
      %36 = vector.broadcast %c20_i32_12 : i32 to vector<16x32xi32>
      %37 = arith.cmpi slt, %35, %36 : vector<16x32xi32>
      %c0_13 = arith.constant 0 : index
      %c0_14 = arith.constant 0 : index
      %c0_15 = arith.constant 0 : index
      %38 = vector.load %arg5[%c0_13, %c0_14, %c0_15] : memref<1x8x32xf32, #tpu.memory_space<vmem>>, vector<1x8x32xf32>
      %cst_16 = arith.constant 0.000000e+00 : f32
      %39 = vector.broadcast %cst_16 : f32 to vector<16x32xf32>
      %40 = arith.select %37, %21, %39 : vector<16x32xi1>, vector<16x32xf32>
      %41 = vector.shape_cast %40 : vector<16x32xf32> to vector<2x8x32xf32>
      %cst_17 = arith.constant dense<0.000000e+00> : vector<8x32xf32>
      %42 = vector.multi_reduction <add>, %41, %cst_17 [0] : vector<2x8x32xf32> to vector<8x32xf32>
      %43 = vector.shape_cast %42 : vector<8x32xf32> to vector<1x8x32xf32>
      %44 = arith.addf %38, %43 : vector<1x8x32xf32>
      %c0_18 = arith.constant 0 : index
      %c0_19 = arith.constant 0 : index
      %c0_20 = arith.constant 0 : index
      %45 = vector.load %arg5[%c0_18, %c0_19, %c0_20] : memref<1x8x32xf32, #tpu.memory_space<vmem>>, vector<1x8x32xf32>
      tpu.vector_store %arg5[%c0_18, %c0_19, %c0_20], %44 {strides = array<i32>} : memref<1x8x32xf32, #tpu.memory_space<vmem>>, vector<1x8x32xf32>,
    } else {
    }
    %true = arith.constant true
    %29 = arith.xori %26, %true : i1
    %30 = arith.extui %29 : i1 to i32
    %c0_i32_10 = arith.constant 0 : i32
    %31 = arith.cmpi ne, %30, %c0_i32_10 : i32
    scf.if %31 {
      %c0_11 = arith.constant 0 : index
      %c0_12 = arith.constant 0 : index
      %c0_13 = arith.constant 0 : index
      %32 = vector.load %arg5[%c0_11, %c0_12, %c0_13] : memref<1x8x32xf32, #tpu.memory_space<vmem>>, vector<1x8x32xf32>
      %33 = vector.shape_cast %21 : vector<16x32xf32> to vector<2x8x32xf32>
      %cst_14 = arith.constant dense<0.000000e+00> : vector<8x32xf32>
      %34 = vector.multi_reduction <add>, %33, %cst_14 [0] : vector<2x8x32xf32> to vector<8x32xf32>
      %35 = vector.shape_cast %34 : vector<8x32xf32> to vector<1x8x32xf32>
      %36 = arith.addf %32, %35 : vector<1x8x32xf32>
      %c0_15 = arith.constant 0 : index
      %c0_16 = arith.constant 0 : index
      %c0_17 = arith.constant 0 : index
      %37 = vector.load %arg5[%c0_15, %c0_16, %c0_17] : memref<1x8x32xf32, #tpu.memory_space<vmem>>, vector<1x8x32xf32>
      tpu.vector_store %arg5[%c0_15, %c0_16, %c0_17], %36 {strides = array<i32>} : memref<1x8x32xf32, #tpu.memory_space<vmem>>, vector<1x8x32xf32>,
    } else {
    }
    return
  }
  func.func @transform_0(%arg0: i32, %arg1: i32, %arg2: i32) -> (i32, i32) {
    %c1_i32 = arith.constant 1 : i32
    %0 = arith.muli %arg0, %c1_i32 : i32
    %1 = arith.addi %0, %arg1 : i32
    %c0_i32 = arith.constant 0 : i32
    return %1, %arg2 : i32, i32
  }
  func.func @transform_1(%arg0: i32, %arg1: i32, %arg2: i32) -> (i32, i32) {
    %c1_i32 = arith.constant 1 : i32
    %0 = arith.muli %arg0, %c1_i32 : i32
    %1 = arith.addi %0, %arg1 : i32
    %c0_i32 = arith.constant 0 : i32
    %c0_i32_0 = arith.constant 0 : i32
    return %1, %c0_i32 : i32, i32
  }
  func.func @transform_2(%arg0: i32, %arg1: i32, %arg2: i32) -> (i32, i32, i32) {
    %c0_i32 = arith.constant 0 : i32
    %c0_i32_0 = arith.constant 0 : i32
    %c0_i32_1 = arith.constant 0 : i32
    return %arg0, %c0_i32, %c0_i32_0 : i32, i32, i32
  }
}

</mosaic_0001>

<bundles_post_ra>
// kernel: tpu_custom_call.1
= control target key start
LH: loop header
LB: loop body
LE: loop exit
PB: predicated region body
PF: predicated region fallthrough
CT: control target
= control target key end

     0   :  { %7 = vsyncpa [#allocation3], 0  ;;  %s741_s0 = inlined_call_operand.vmem [shape: f32[20,32], index: 0, kind: input, shape index: {}]   ;;  %s742_s1 = inlined_call_operand.vmem [shape: s32[20,1], index: 1, kind: input, shape index: {}]   ;;  %s743_s2 = inlined_call_operand.hbm [shape: f32[2,8,32], index: 2, kind: output, shape index: {}]  }
   0x1   :  { %9 = vsyncpa [#allocation3 + $0x1], 0  ;;  %s605_s9 = smov 0   ;;  %s607_s10 = smov 0  }
   0x2   :  { %s609_s11 = smov 0   ;;  %s611_s12 = smov 0  }
   0x3   :  { %s613_s13 = smov 0   ;;  %s615_s14 = smov 0  }
   0x4 LB: > { %s425_s15 = sadd.s32 4294967295, %s585_s14   ;;  %s426_s16 = sadd.s32 4294967294, %s585_s14   ;;  %s585_s14 = sphi %s615_s14, %s15_s14   ;;  %s581_s13 = sphi %s613_s13, %s750_s13   ;;  %s577_s12 = sphi %s611_s12, %s749_s12   ;;  %s573_s11 = sphi %s609_s11, %s748_s11   ;;  %s569_s10 = sphi %s607_s10, %s747_s10   ;;  %s565_s9 = sphi %s605_s9, %s746_s9  }
   0x5   : > { %s34_s17 = sadd.s32 1, %s581_s13  ;;  %s99_s18 = sadd.s32 1, %s573_s11 }
   0x6   : > { %p36_p0 = scmp.ge.s32.totalorder %s34_s17, 2  ;;  %p109_p1 = scmp.ne.s32.totalorder %s573_s11, %s569_s10 }
   0x7   : > { %p110_p2 = scmp.eq.s32.totalorder %s425_s15, 1  ;;  %p115_p3 = scmp.ne.s32.totalorder %s569_s10, %s565_s9 }
   0x8   : > { %s752_s17 = smov (%p36_p0, %s34_s17), 0  ;;  %p116_p5 = scmp.eq.s32.totalorder %s426_s16, 1 }
   0x9   : > { %p645_p4 = por %p110_p2, %p109_p1  ;;  %s96_s20 = ssub.s32 %s581_s13, %s752_s17 }
   0xa   : > { %p429_p6 = scmp.ge.s32.totalorder %s585_s14, 1  ;;  %p97_p7 = scmp.eq.s32.totalorder %s96_s20, 0 }
   0xb   : > { %p652_p8 = por %p116_p5, %p115_p3  ;;  %p175_p9 = scmp.lt.s32.totalorder %s585_s14, 3 }
   0xc   : > { %s658_s22 = scalar_select %p97_p7, %s573_s11, %s99_s18  }
   0xd   : > { %p176_p10 = pnand %p429_p6, %p175_p9 }
   0xe   : > { %s431_s23 = sshll.u32 (!%p176_p10), %s577_s12, 1  ;;  %v587_v0 = vmov (!%p176_p10), 0   ;;  %s212_s28 = sand.u32 (!%p176_p10), 1, %s569_s10   ;;  %vm256_vm0 = vcmask (!%p176_p10), 261120   ;;  %v588_v3 = vmov (!%p176_p10), 0.0   ;;  %v262_v4 = vlaneseq (!%p176_p10) }
   0xf   : > { %179 = sbr.rel (%p176_p10) target bundleno = 220 (0xdc), region = 28  ;;  %502 = vset.pattern.permute.xlu0 (!%p176_p10), %v587_v0  ;;  %p221_p11 = scmp.lt.s32.totalorder (!%p176_p10), %s431_s23, 2 }
  0x10   : > { %s430_s29 = sshll.u32 (!%p176_p10), %s212_s28, 3  ;;  %s443_s30 = sshll.u32 (!%p176_p10), %s577_s12, 4  ;;  %v263_v6 = vand.u32 (!%p176_p10), 127, %v262_v4 }
  0x11   : > { %s668_s3 = scalar_lea.vmem (!%p176_p10), [#allocation2], %s430_s29  ;;  %s674_s4 = sadd.s32 (!%p176_p10), 16, %s443_s30 }
  0x12   : > { %257 = vst.msk [vmem:[%s668_s3] sm:$0xff] (!%p176_p10), %vm256_vm0, %v588_v3  ;;  %p436_p12 = scmp.le.s32.totalorder (!%p176_p10), %s674_s4, 20 }
  0x16   : > { %s754_s23 = smov (!%p221_p11, %s431_s23), 2  ;;  %v299_v28 = vshrl.u32 (!%p436_p12), %v262_v4, 7  ;;  %v301_v29 = vstv (!%p436_p12), %s443_s30 }
  0x17   : > { %s432_s24 = sshll.u32 %s754_s23, 3 }
  0x18   : > { %s243_s27 = scalar_lea.vmem %s742_s1, %s432_s24  ;;  %s227_s7 = scalar_lea.vmem %s741_s0, %s432_s24  ;;  %v300_v30 = vadd.s32 (!%p436_p12), 8, %v299_v28  ;;  %v302_v31 = vadd.s32 (!%p436_p12), %v301_v29, %v299_v28 }
  0x19   : > { %v260_v1 = vld [vmem:[%s243_s27] sm:$0xff]  ;;  %v261_v2 = vld [vmem:[%s243_s27 + $0x8] sm:$0xff] }
  0x1a   : > { %265 = vperm.xlu0 %502, %v260_v1   ;;  %v258_v5 = vld [vmem:[%s227_s7] sm:$0xff]  ;;  %v259_v8 = vld [vmem:[%s227_s7 + $0x8] sm:$0xff]  ;;  %v303_v32 = vadd.s32 (!%p436_p12), %v301_v29, %v300_v30  ;;  %vm304_vm3 = vcmp.lt.s32.totalorder (!%p436_p12), %v302_v31, 20 }
  0x1b   : > { %v272_v7 = vsub.f32 1.0, %v258_v5  ;;  %v273_v10 = vsub.f32 1.0, %v259_v8  ;;  %v306_v36 = vld [vmem:[%s668_s3] sm:$0xff] (!%p436_p12) }
  0x1c   : > { %vm305_vm4 = vcmp.lt.s32.totalorder (!%p436_p12), %v303_v32, 20 }
  0x1e   : > { %268 = vperm.xlu0 %502, %v261_v2  }
  0x99   : > { %v266_v9 = vpop.permute.xlu0 %265 }
  0x9a   : > { %vm270_vm1 = vcmp.eq.s32.totalorder %v263_v6, %v266_v9 }
  0x9b   : > { %v274_v11 = vsel %vm270_vm1, %v258_v5, %v272_v7 }
  0x9c   : > { %503 = vlog2.f32 %v274_v11  ;;  %v284_v16 = vsub.f32 1.0, %v274_v11 }
  0x9d   : > { %v269_v12 = vpop.permute.xlu0 %268 }
  0x9e   : > { %vm271_vm2 = vcmp.eq.s32.totalorder %v263_v6, %v269_v12  ;;  %v286_v20 = vmul.f32 %v284_v16, %v284_v16 }
  0x9f   : > { %v275_v13 = vsel %vm271_vm2, %v259_v8, %v273_v10 }
  0xa0   : > { %505 = vlog2.f32 %v275_v13  ;;  %v285_v22 = vsub.f32 1.0, %v275_v13 }
  0xa2   : > { %v287_v26 = vmul.f32 %v285_v22, %v285_v22 }
  0xa6   : > { %v504_v14 = vpop.eup %503 }
  0xa7   : > { %v277_v15 = vmul.f32 0.6931472, %v504_v14 }
  0xa9   : > { %v280_v17 = vmax.f32 %v277_v15, -100.0 }
  0xaa   : > { %v506_v18 = vpop.eup %505 }
  0xab   : > { %v282_v19 = vsub.f32 0.0, %v280_v17  ;;  %v279_v21 = vmul.f32 0.6931472, %v506_v18  ;;  %296 = sbr.rel (%p436_p12) target bundleno = 186 (0xba), region = 36 }
  0xad   : > { %v288_v23 = vmul.f32 %v286_v20, %v282_v19  ;;  %v281_v24 = vmax.f32 %v279_v21, -100.0 }
  0xaf   : > { %v283_v25 = vsub.f32 0.0, %v281_v24  ;;  %v307_v33 = vsel (!%p436_p12), %vm304_vm3, %v288_v23, 0.0 }
  0xb0   : > { %v310_v34 = vsel (!%p436_p12), %vm256_vm0, %v307_v33, 0.0 }
  0xb1   : > { %v289_v27 = vmul.f32 %v287_v26, %v283_v25 }
  0xb3   : > { %v308_v35 = vsel %vm305_vm4, %v289_v27, 0.0 }
  0xb4   : > { %v311_v37 = vsel %vm256_vm0, %v308_v35, 0.0 }
  0xb5   : > { %v312_v38 = vadd.f32 %v311_v37, %v310_v34 }
  0xb7   : > { %v313_v39 = vadd.f32 %v312_v38, %v306_v36 }
  0xb9   : > { %314 = vst.msk [vmem:[%s668_s3] sm:$0xff] %vm256_vm0, %v313_v39 }
  0xba PF: > { %p438_p13 = scmp.gt.s32.totalorder %s674_s4, 20 }
  0xbb   : > { %v321_v41 = vsel (!%p438_p13), %vm256_vm0, %v288_v23, 0.0  ;;  %v322_v42 = vsel (!%p438_p13), %vm256_vm0, %v289_v27, 0.0 }
  0xbc   : > { %318 = sbr.rel (%p438_p13) target bundleno = 196 (0xc4), region = 40  ;;  %v323_v43 = vadd.f32 (!%p438_p13), %v322_v42, %v321_v41 }
  0xc0   : > { %v319_v40 = vld [vmem:[%s668_s3] sm:$0xff] (!%p438_p13) }
  0xc1   : > { %v324_v44 = vadd.f32 (!%p438_p13), %v323_v43, %v319_v40 }
  0xc3   : > { %325 = vst.msk [vmem:[%s668_s3] sm:$0xff] %vm256_vm0, %v324_v44 }
  0xc4 PF: > { %s440_s8 = sshll.u32 %s577_s12, 7  ;;  %s340_s20 = sshll.u32 %s668_s3, 4  ;;  %s341_s20 = int_to_ptr.vmem [resolvable:$true] %s340_s20 }
  0xc5   : > { %s697_s18 = scalar_lea.hbm %s743_s2, %s440_s8  ;;  %s327_s23 = scalar_lea.sflag [#allocation3], %s212_s28 }
  0xc6   : > { %s507_s24 = scalar_lea.vmem %s341_s20, 128  ;;  %s589_s25 = smov [#allocation2]  }
  0xc7   : > { %p508_p0 = scmp.ne.s32.totalorder %s341_s20, %s507_s24  ;;  %s511_s26 = sshll.u32 %s589_s25, 4  ;;  %s512_s26 = int_to_ptr.vmem [resolvable:$false] %s511_s26 }
  0xc8   : > { %s513_s27 = scalar_lea.vmem %s512_s26, 256  ;;  %p514_p3 = scmp.lt.s32.totalorder %s341_s20, %s512_s26 }
  0xc9   : > { %p509_p1 = pnand %p508_p0, %p645_p4  ;;  %p515_p5 = scmp.lt.s32.totalorder %s513_s27, %s507_s24 }
  0xcb   : > { %p510_p2 = pneg %p509_p1  ;;  %p516_p6 = por %p515_p5, %p514_p3 }
  0xcd   : > { %p517_p7 = pnand %p516_p6, %p510_p2 }
  0xcf   : > { %520 = shalt.err (!%p517_p7)
}
  0xd0   : > { %s521_s12 = scalar_lea.hbm %s697_s18, 128  ;;  %s525_s30 = scalar_lea.hbm %s743_s2, 256 }
  0xd1   : > { %p522_p9 = scmp.ne.s32.totalorder %s697_s18, %s521_s12  ;;  %p526_p12 = scmp.lt.u32.totalorder %s697_s18, %s743_s2 }
  0xd2   : > { %p527_p13 = scmp.lt.u32.totalorder %s525_s30, %s521_s12  ;;  %p529_p1 = scmp.lt.u32.totalorder %s521_s12, %s697_s18 }
  0xd3   : > { %p523_p10 = pnand %p522_p9, %p645_p4 }
  0xd4   : > { %p528_p0 = por %p527_p13, %p526_p12 }
  0xd5   : > { %p524_p11 = pneg %p523_p10 }
  0xd6   : > { %p530_p2 = por %p529_p1, %p528_p0 }
  0xd8   : > { %p531_p3 = pnand %p530_p2, %p524_p11 }
  0xda   : > { %534 = shalt.err (!%p531_p3)
}
  0xdb   : > { %445 = dma.vmem_to_hbm [thread:$0]  (%p645_p4), %s341_s20, 128, %s697_s18, %s327_s23  }
  0xdc PF: > { %p451_p5 = scmp.ge.s32.totalorder %s585_s14, 2  ;;  %s352_s5 = sand.u32 1, %s565_s9  }
  0xdd   : > { %s353_s6 = scalar_lea.sflag [#allocation3], %s352_s5 }
  0xde   : > { %p448_p6 = pnand %p451_p5, %p652_p8 }
  0xe0   : > { %560 = dma.done.wait (!%p448_p6), %s353_s6, 128  }
  0xe1   : > { %562 = vsyncadd (!%p448_p6), %s353_s6, 4294967168  ;;  %s15_s14 = sadd.s32 1, %s585_s14   ;;  %s746_s9 = smov %s569_s10 }
  0xe2   : > { %p12_p7 = scmp.ge.s32.totalorder %s15_s14, 4   ;;  %s747_s10 = smov %s573_s11 }
  0xe3   : > { %s748_s11 = smov %s658_s22  ;;  %s749_s12 = smov %s581_s13 }
  0xe4   : > { %s750_s13 = smov %s752_s17  ;;  %14 = sbr.rel (!%p12_p7) target bundleno = 4 (0x4), region = 78 }
  0xeb   :  { %358 = vsyncpa [#allocation3], 1 }
  0xec   :  { %360 = vsyncpa [#allocation3 + $0x1], 1 }

</bundles_post_ra>
